<compile_context>
chip_gen: v7x
topology: tpu7x:2x2x1
jax: 0.10.0
libtpu: 0.0.40
codegen_flags: <defaults>
</compile_context>

<pallas_src>
import functools

import jax
import jax.numpy as jnp
from jax import lax
from jax.experimental import pallas as pl
from jax.experimental.pallas import tpu as pltpu


def _softplus(x):
    # Matches torch.nn.functional.softplus(beta=1, threshold=20):
    # x for x > 20, log1p(exp(x)) otherwise.
    return jnp.where(x > 20.0, x, jnp.log1p(jnp.exp(jnp.minimum(x, 20.0))))


def _argproj_kernel(x_ref, w_ref, b_ref, o_ref):
    # Fused projection, lane-dense result:
    #   W (3, K) contracted with x (tile_m, K) over K  ->  (3, tile_m).
    y = lax.dot_general(
        w_ref[...],
        x_ref[...],
        dimension_numbers=(((1,), (1,)), ((), ())),
        preferred_element_type=jnp.float32,
    )
    y = y + b_ref[...]            # (3, 1) bias broadcast across lanes
    sp = _softplus(y)             # cheap; EUP slot is slack in this kernel
    # Row 0: df = 2 + softplus ; row 1: loc = identity ; row 2: scale = softplus.
    row = lax.broadcasted_iota(jnp.int32, y.shape, 0)
    out = jnp.where(row == 0, 2.0 + sp, jnp.where(row == 1, y, sp))
    o_ref[...] = out.astype(o_ref.dtype)


def _round_up(v, m):
    return ((v + m - 1) // m) * m


@functools.partial(jax.jit, static_argnames=("tile_m",))
def arg_proj_forward(x, w, b, tile_m=1024):
    """ArgProj forward (StudentT domain_map).

    x: (batch, seq, in_features) f32
    w: (3, in_features) f32  -- PyTorch nn.Linear (out, in) layout, rows
                                stacked in arg order (df, loc, scale)
    b: (3,) f32              -- stacked biases
    Returns (df, loc, scale), each (batch, seq) f32.
    """
    batch, seq, k = x.shape
    n_args = w.shape[0]
    m = batch * seq

    # Largest tile not exceeding the (row-padded) problem; keeps tiny demo
    # shapes runnable while defaulting to big tiles for real workloads.
    # NOTE: on v7x keep m // tile >= 2 for megacore; with K=32 the
    # double-buffered x tile (2 * tile * K * 4 B) is far under the 32 MiB
    # default scoped VMEM — cap tile or raise vmem_limit_bytes only if
    # in_features grows into the thousands.
    tile = min(tile_m, _round_up(m, 8))
    m_pad = _round_up(m, tile)

    x_flat = x.reshape(m, k)
    if m_pad != m:
        # Padded rows compute softplus(bias) -> finite garbage, sliced off.
        x_flat = jnp.pad(x_flat, ((0, m_pad - m), (0, 0)))
    b2 = b.reshape(n_args, 1).astype(jnp.float32)

    grid = (m_pad // tile,)

    cost = pl.CostEstimate(
        flops=2 * m_pad * k * n_args,
        transcendentals=2 * m_pad,
        bytes_accessed=m_pad * k * 4 + n_args * m_pad * 4
        + n_args * k * 4 + n_args * 4,
    )

    out = pl.pallas_call(
        _argproj_kernel,
        out_shape=jax.ShapeDtypeStruct((n_args, m_pad), jnp.float32),
        grid_spec=pltpu.PrefetchScalarGridSpec(
            num_scalar_prefetch=0,
            grid=grid,
            in_specs=[
                pl.BlockSpec((tile, k), lambda i: (i, 0)),     # x row-tile
                pl.BlockSpec((n_args, k), lambda i: (0, 0)),   # fused W (resident)
                pl.BlockSpec((n_args, 1), lambda i: (0, 0)),   # fused b (resident)
            ],
            out_specs=pl.BlockSpec((n_args, tile), lambda i: (0, i)),
        ),
        compiler_params=pltpu.CompilerParams(
            dimension_semantics=("parallel",),
        ),
        cost_estimate=cost,
    )(x_flat, w.astype(jnp.float32), b2)

    # Glue: drop row padding, un-flatten, per-arg split + squeeze(-1).
    out = out[:, :m]
    df = out[0].reshape(batch, seq)
    loc = out[1].reshape(batch, seq)
    scale = out[2].reshape(batch, seq)
    return df, loc, scale


def _reference(x, w, b):
    y = jnp.einsum("bsk,nk->bsn", x, w) + b
    df = 2.0 + jax.nn.softplus(y[..., 0])
    loc = y[..., 1]
    scale = jax.nn.softplus(y[..., 2])
    return df, loc, scale


def _check(batch, seq, in_features, key, tile_m=1024):
    n_total = 3  # args_dim = {"df": 1, "loc": 1, "scale": 1}
    kx, kw, kb = jax.random.split(key, 3)
    x = jax.random.normal(kx, (batch, seq, in_features), dtype=jnp.float32)
    w = jax.random.normal(kw, (n_total, in_features), dtype=jnp.float32) * 0.1
    b = jax.random.normal(kb, (n_total,), dtype=jnp.float32) * 0.1

    df, loc, scale = arg_proj_forward(x, w, b, tile_m=tile_m)
    jax.block_until_ready((df, loc, scale))

    df_r, loc_r, scale_r = _reference(x, w, b)
    assert df.shape == (batch, seq) and loc.shape == (batch, seq)
    assert jnp.allclose(df, df_r, atol=1e-5)
    assert jnp.allclose(loc, loc_r, atol=1e-5)
    assert jnp.allclose(scale, scale_r, atol=1e-5)


if __name__ == "__main__":
    key = jax.random.PRNGKey(0)
    k0, k1 = jax.random.split(key)

    # Canonical small shape from the module: batch=2, seq=8, in_features=32.
    _check(batch=2, seq=8, in_features=32, key=k0)

    # Exercise the multi-tile + row-padding path (m=2080 -> 3 tiles of 1024).
    _check(batch=4, seq=520, in_features=32, key=k1)

    print("KERNEL_OK")
</pallas_src>

<mosaic_0001>
module attributes {stable_mosaic.version = 11 : i64} {
  func.func @_argproj_kernel(%arg0: i32, %arg1: memref<16x32xf32, #tpu.memory_space<vmem>>, %arg2: memref<3x32xf32, #tpu.memory_space<vmem>>, %arg3: memref<3x1xf32, #tpu.memory_space<vmem>>, %arg4: memref<3x16xf32, #tpu.memory_space<vmem>>) attributes {dimension_semantics = [#tpu.dimension_semantics<parallel>], iteration_bounds = array<i64: 1>, scalar_prefetch = 0 : i64, scratch_operands = 0 : i64, tpu.core_type = #tpu.core_type<tc>, window_params = [{transform_indices = @transform_0, window_bounds = array<i64: 16, 32>}, {pipeline_mode = #tpu.pipeline_mode<synchronous>, transform_indices = @transform_1, window_bounds = array<i64: 3, 32>}, {pipeline_mode = #tpu.pipeline_mode<synchronous>, transform_indices = @transform_2, window_bounds = array<i64: 3, 1>}, {transform_indices = @transform_3, window_bounds = array<i64: 3, 16>}]} {
    %c0 = arith.constant 0 : index
    %c0_0 = arith.constant 0 : index
    %0 = vector.load %arg2[%c0, %c0_0] : memref<3x32xf32, #tpu.memory_space<vmem>>, vector<3x32xf32>
    %c0_1 = arith.constant 0 : index
    %c0_2 = arith.constant 0 : index
    %1 = vector.load %arg1[%c0_1, %c0_2] : memref<16x32xf32, #tpu.memory_space<vmem>>, vector<16x32xf32>
    %cst = arith.constant dense<0.000000e+00> : vector<3x16xf32>
    %2 = tpu.matmul %0, %1, %cst {dimension_numbers = #tpu.dot_dimension_numbers<[1], [1], [0], [0], [0, 0, 1, 0], [], []>} : vector<3x32xf32>, vector<16x32xf32>, vector<3x16xf32> -> vector<3x16xf32>
    %c0_3 = arith.constant 0 : index
    %c0_4 = arith.constant 0 : index
    %3 = vector.load %arg3[%c0_3, %c0_4] : memref<3x1xf32, #tpu.memory_space<vmem>>, vector<3x1xf32>
    %4 = vector.broadcast %3 : vector<3x1xf32> to vector<3x16xf32>
    %5 = arith.addf %2, %4 : vector<3x16xf32>
    %cst_5 = arith.constant 2.000000e+01 : f32
    %6 = vector.broadcast %cst_5 : f32 to vector<3x16xf32>
    %7 = arith.cmpf ogt, %5, %6 : vector<3x16xf32>
    %cst_6 = arith.constant 2.000000e+01 : f32
    %8 = vector.broadcast %cst_6 : f32 to vector<3x16xf32>
    %9 = arith.minimumf %5, %8 : vector<3x16xf32>
    %10 = math.exp %9 : vector<3x16xf32>
    %11 = math.log1p %10 : vector<3x16xf32>
    %12 = arith.select %7, %5, %11 : vector<3x16xi1>, vector<3x16xf32>
    %13 = tpu.iota {dimensions = array<i32: 0>} : vector<3x16xi32>
    %c0_i32 = arith.constant 0 : i32
    %14 = vector.broadcast %c0_i32 : i32 to vector<3x16xi32>
    %15 = arith.cmpi eq, %13, %14 : vector<3x16xi32>
    %cst_7 = arith.constant 2.000000e+00 : f32
    %16 = vector.broadcast %cst_7 : f32 to vector<3x16xf32>
    %17 = arith.addf %16, %12 : vector<3x16xf32>
    %c1_i32 = arith.constant 1 : i32
    %18 = vector.broadcast %c1_i32 : i32 to vector<3x16xi32>
    %19 = arith.cmpi eq, %13, %18 : vector<3x16xi32>
    %20 = arith.select %19, %5, %12 : vector<3x16xi1>, vector<3x16xf32>
    %21 = arith.select %15, %17, %20 : vector<3x16xi1>, vector<3x16xf32>
    %c0_8 = arith.constant 0 : index
    %c0_9 = arith.constant 0 : index
    %22 = vector.load %arg4[%c0_8, %c0_9] : memref<3x16xf32, #tpu.memory_space<vmem>>, vector<3x16xf32>
    tpu.vector_store %arg4[%c0_8, %c0_9], %21 {strides = array<i32>} : memref<3x16xf32, #tpu.memory_space<vmem>>, vector<3x16xf32>,
    return
  }
  func.func @transform_0(%arg0: i32) -> (i32, i32) {
    %c0_i32 = arith.constant 0 : i32
    %c0_i32_0 = arith.constant 0 : i32
    return %arg0, %c0_i32 : i32, i32
  }
  func.func @transform_1(%arg0: i32) -> (i32, i32) {
    %c0_i32 = arith.constant 0 : i32
    %c0_i32_0 = arith.constant 0 : i32
    %c0_i32_1 = arith.constant 0 : i32
    return %c0_i32, %c0_i32_0 : i32, i32
  }
  func.func @transform_2(%arg0: i32) -> (i32, i32) {
    %c0_i32 = arith.constant 0 : i32
    %c0_i32_0 = arith.constant 0 : i32
    %c0_i32_1 = arith.constant 0 : i32
    return %c0_i32, %c0_i32_0 : i32, i32
  }
  func.func @transform_3(%arg0: i32) -> (i32, i32) {
    %c0_i32 = arith.constant 0 : i32
    %c0_i32_0 = arith.constant 0 : i32
    return %c0_i32, %arg0 : i32, i32
  }
}

</mosaic_0001>

<bundles_post_ra>
// kernel: squeeze.5
= control target key start
LH: loop header
LB: loop body
LE: loop exit
PB: predicated region body
PF: predicated region fallthrough
CT: control target
= control target key end

     0   :  { %s85_s0 = inlined_call_operand.vmem [shape: f32[16], index: 0, kind: input, shape index: {}]   ;;  %s86_s1 = inlined_call_operand.hbm [shape: f32[2,8], index: 1, kind: output, shape index: {}]  }
   0x1   :  { %v5_v0 = vld [vmem:[%s85_s0] sm:$0x1] }
   0x2   :  { %2 = vsyncpa [#allocation1], 0  ;;  %6 = vst [vmem:[#allocation3] sm:$0x1] %v5_v0  ;;  %vm8_vm0 = vcmask 64512   ;;  %s58_s0 = smov 120  }
   0x3   :  { %s59_s8 = smov [#allocation0]  }
   0x4   :  { %s26_s9 = sshll.u32 %s59_s8, 4  ;;  %s27_s9 = int_to_ptr.vmem [resolvable:$true] %s26_s9 }
   0x5   :  { %s34_s10 = scalar_lea.vmem %s27_s9, 32  ;;  %p39_p1 = scmp.lt.s32.totalorder %s27_s9, %s27_s9 }
   0x6   :  { %p35_p0 = scmp.ne.s32.totalorder %s27_s9, %s34_s10  ;;  %p40_p2 = scmp.lt.s32.totalorder %s34_s10, %s34_s10 }
   0x8   :  { %p41_p3 = por %p40_p2, %p39_p1 }
   0x9   :  { %v10_v1 = vld [vmem:[#allocation3] sm:$0x1]  }
   0xa   :  { %v7_v2 = vld [vmem:[#allocation3] sm:$0x1]   ;;  %11 = vrot.lane.b32.xlu0 %v10_v1, %s58_s0  ;;  %p42_p4 = pnand %p41_p3, %p35_p0 }
   0xb   :  { %9 = vst.msk [vmem:[#allocation2] sm:$0x1] %vm8_vm0, %v7_v2  }
  0x7c   :  { %v12_v3 = vpop.permute.xlu0 %11  }
  0x7d   :  { %15 = vst.msk [vmem:[#allocation2 + $0x1] sm:$0x1] %vm8_vm0, %v12_v3  }
  0x84   :  { %v19_v4 = vld [vmem:[#allocation2] sm:$0x3] }
  0x85   :  { %21 = vst [vmem:[#allocation0] sm:$0x3] %v19_v4 }
  0x86   :  { %45 = shalt.err (!%p42_p4)
}
  0x87   :  { %s46_s13 = scalar_lea.hbm %s86_s1, 32 }
  0x88   :  { %p47_p5 = scmp.ne.s32.totalorder %s86_s1, %s46_s13  ;;  %p50_p6 = scmp.lt.u32.totalorder %s46_s13, %s86_s1 }
  0x8a   :  { %p52_p7 = pnand %p50_p6, %p47_p5 }
  0x8c   :  { %55 = shalt.err (!%p52_p7)
}
  0x8d   :  { %29 = dma.vmem_to_hbm [thread:$0]  %s27_s9, 32, %s86_s1, [#allocation1]  }
  0x8e   :  { %56 = dma.done.wait [#allocation1], 32  }
  0x8f   :  { %57 = vsyncadd [#allocation1], 4294967264 }
  0x90   :  { %31 = vsyncpa [#allocation1], 1 }

// kernel: arg_proj_forward.1
= control target key start
LH: loop header
LB: loop body
LE: loop exit
PB: predicated region body
PF: predicated region fallthrough
CT: control target
= control target key end

     0   :  { %8 = vsyncpa [#allocation3], 0  ;;  %s198_s12 = smov [#allocation2]   ;;  %s246_s0 = inlined_call_operand.hbm [shape: f32[16,32], index: 0, kind: input, shape index: {}]   ;;  %s247_s1 = inlined_call_operand.vmem [shape: f32[3,32], index: 1, kind: input, shape index: {}]   ;;  %s248_s2 = inlined_call_operand.vmem [shape: f32[3,1], index: 2, kind: input, shape index: {}]   ;;  %s249_s3 = inlined_call_operand.vmem [shape: f32[3,16], index: 3, kind: output, shape index: {}]  }
   0x1   :  { %s14_s13 = sshll.u32 %s198_s12, 4  ;;  %s174_s16 = scalar_lea.hbm %s246_s0, 256  ;;  %s15_s13 = int_to_ptr.vmem [resolvable:$true] %s14_s13 }
   0x2   :  { %p175_p0 = scmp.ne.s32.totalorder %s246_s0, %s174_s16  ;;  %p178_p1 = scmp.lt.u32.totalorder %s174_s16, %s246_s0 }
   0x4   :  { %p180_p2 = pnand %p178_p1, %p175_p0 }
   0x6   :  { %183 = shalt.err (!%p180_p2)
}
   0x7   :  { %s184_s21 = scalar_lea.vmem %s15_s13, 256  ;;  %p189_p4 = scmp.lt.s32.totalorder %s15_s13, %s15_s13 }
   0x8   :  { %p185_p3 = scmp.ne.s32.totalorder %s15_s13, %s184_s21  ;;  %p190_p5 = scmp.lt.s32.totalorder %s184_s21, %s184_s21 }
   0xa   :  { %p191_p6 = por %p190_p5, %p189_p4 }
   0xc   :  { %p192_p7 = pnand %p191_p6, %p185_p3 }
   0xe   :  { %195 = shalt.err (!%p192_p7)
}
   0xf   :  { %s199_s22 = smov 128   ;;  %s200_s23 = smov 8  }
  0x10   :  { %20 = dma.hbm_to_vmem [thread:$0]  %s246_s0, 256, %s15_s13, [#allocation3], %s199_s22, %s199_s22, %s200_s23  }
  0x11   :  { %196 = dma.done.wait [#allocation3], 256  }
  0x12   :  { %197 = vsyncadd [#allocation3], 4294967040  ;;  %v201_v0 = vmov 0.0|0.0   ;;  %vm202_vm0 = vmmov 0   ;;  %v203_v1 = vmov 0.0   ;;  %v204_v2 = vmov 0  }
  0x13   :  { %158 = vmatprep.subr.bf16.mxu0 %v201_v0  ;;  %155 = vmatprep.mubr.msk.f32.mxu0 %vm202_vm0, %v203_v1  ;;  %vm37_vm1 = vcmask 261120   ;;  %v29_v3 = vld [vmem:[#allocation2] sm:$0xff]  ;;  %v30_v4 = vld [vmem:[#allocation2 + $0x8] sm:$0xff]  ;;  %v131_v17 = vlaneseq  ;;  %vm138_vm7 = vcmask 124928  }
  0x14   :  { %169 = vset.pattern.permute.xlu0 %v204_v2  ;;  %vm160_vm2 = vmpackc.low %vm37_vm1, %vm37_vm1  ;;  %v159_v5 = vpack.c.bf16 %v30_v4, %v29_v3  ;;  %v31_v6 = vld [vmem:[%s248_s2] sm:$0x7] }
  0x15   :  { %34 = vperm.xlu0 %169, %v31_v6   ;;  %v28_v7 = vld [vmem:[%s247_s1] sm:$0x7]  ;;  %v132_v20 = vshrl.u32 %v131_v17, 7 }
  0x16   :  { %161 = vmatpush3.bf16.xpose.msk.msra.mxu0 %vm160_vm2, %v159_v5 }
  0x17   :  { %vm135_vm4 = vcmp.eq.s32.totalorder %v132_v20, 1  ;;  %vm133_vm6 = vcmp.eq.s32.totalorder %v132_v20, 0 }
  0x1d   :  { %156 = vmatmul.mubr.msk.f32.vlgmr.msra.gmra.mrb[0].mxu0 %vm37_vm1, %v28_v7 }
  0x94   :  { %v35_v8 = vpop.permute.xlu0 %34 }
  0xf0   :  { %v113_v9 = vpop.f32.mrb[0].mxu0 }
  0xf1   :  { %v114_v10 = vadd.f32 %v113_v9, %v35_v8  ;;  %v157_v11 = vpop.f32.mrb[1].mxu0 }
  0xf3   :  { %v118_v12 = vmin.f32 %v114_v10, 20.0  ;;  %vm117_vm5 = vcmp.gt.f32.partialorder %v114_v10, 20.0 }
  0xf5   :  { %v119_v13 = vmul.f32 1.442695, %v118_v12 }
  0xf7   :  { %170 = vpow2.f32 %v119_v13 }
 0x101   :  { %v171_v14 = vpop.eup %170 }
 0x102   :  { %v121_v15 = vadd.f32 1.0, %v171_v14  ;;  %v124_v16 = vmul.f32 -0.5, %v171_v14  ;;  %v127_v19 = vand.u32 2147483647, %v171_v14 }
 0x104   :  { %172 = vlog2.f32 %v121_v15  ;;  %v125_v18 = vadd.f32 1.0, %v124_v16  ;;  %vm128_vm3 = vcmp.lt.f32.partialorder %v127_v19, 0.0004427343 }
 0x106   :  { %v126_v23 = vmul.f32 %v171_v14, %v125_v18 }
 0x10e   :  { %v173_v21 = vpop.eup %172 }
 0x10f   :  { %v123_v22 = vmul.f32 0.6931472, %v173_v21 }
 0x111   :  { %v129_v24 = vsel %vm128_vm3, %v126_v23, %v123_v22 }
 0x112   :  { %v130_v25 = vsel %vm117_vm5, %v114_v10, %v129_v24 }
 0x113   :  { %v134_v26 = vadd.f32 2.0, %v130_v25  ;;  %v136_v27 = vsel %vm135_vm4, %v114_v10, %v130_v25 }
 0x115   :  { %v137_v28 = vsel %vm133_vm6, %v134_v26, %v136_v27 }
 0x116   :  { %139 = vst.msk [vmem:[%s249_s3] sm:$0x7] %vm138_vm7, %v137_v28 }
 0x117   :  { %144 = vsyncpa [#allocation3], 1 }

</bundles_post_ra>
